<compile_context>
chip_gen: v7x
topology: tpu7x:2x2x1
jax: 0.10.0
libtpu: 0.0.40
codegen_flags: <defaults>
</compile_context>

<pallas_src>
import numpy as np
import jax
import jax.numpy as jnp
from jax.experimental import pallas as pl
from jax.experimental.pallas import tpu as pltpu

# ---------------- configuration (small synthetic sizes) ----------------
B      = 2            # batch
D      = 32           # entity_dim == relation_dim
D1, D2 = 4, 8         # emb_2D_d1 * emb_2D_d2 == D
KSZ    = 3            # conv kernel_size
COUT   = 4            # num_out_channels
N_ENT  = 256          # num_entities
N_REL  = 16           # num_relations
H_OUT  = 2 * D1 - KSZ + 1
W_OUT  = D2 - KSZ + 1
HW     = H_OUT * W_OUT
FEAT   = COUT * HW    # ConvE feat_dim
BN_EPS = 1e-5

# Entity tile: full table at toy size (grid=(1,)); at realistic N_ENT use
# 512-2048 (multiple of 128, even tile count for v7x megacore balance).
TN   = N_ENT if N_ENT <= 512 else 512
ROWS = ((3 * B + 7) // 8) * 8     # LHS rows padded to a sublane multiple


# ---------------- prologue kernel: ConvE features + query vectors -> bf16 LHS ----------------
def prologue_kernel(stacked_ref, w2_ref, bbig_ref, fcw2_ref, fcb2_ref, qpack_ref,
                    lhs_ref):
    f32 = jnp.float32
    # ConvE: conv-as-matmul (bn0 folded into w2) + bias + relu, then fc with
    # bn2 folded into fcw2/fcb2, then relu.  Dropouts are identity in eval.
    h = jnp.dot(stacked_ref[...], w2_ref[...], preferred_element_type=f32)
    h = jnp.maximum(h + bbig_ref[...], 0.0)                                # (B, FEAT)
    xc = jnp.maximum(jnp.dot(h, fcw2_ref[...], preferred_element_type=f32)
                     + fcb2_ref[...], 0.0)                                 # (B, D)
    # ComplEx / DistMult query vectors from the packed (B, 6*D) embeddings.
    q = qpack_ref[...]
    e1r, rr  = q[:, 0 * D:1 * D], q[:, 1 * D:2 * D]
    e1i, ri  = q[:, 2 * D:3 * D], q[:, 3 * D:4 * D]
    e1d, rd  = q[:, 4 * D:5 * D], q[:, 5 * D:6 * D]
    cre = rr * e1r - ri * e1i
    cim = rr * e1i + ri * e1r
    dmq = e1d * rd
    # Block-diagonal (ROWS, 4*D) LHS -> one 128-deep contraction yields all
    # three raw score rows in the scoring kernel.  Built ONCE here.
    z = jnp.zeros((B, D), f32)
    pieces = [jnp.concatenate([xc,  z,   z,   z  ], axis=1),
              jnp.concatenate([z,   cre, cim, z  ], axis=1),
              jnp.concatenate([z,   z,   z,   dmq], axis=1)]
    if ROWS > 3 * B:
        pieces.append(jnp.zeros((ROWS - 3 * B, 4 * D), f32))
    lhs_ref[...] = jnp.concatenate(pieces, axis=0).astype(jnp.bfloat16)


def build_lhs(stacked, qpack, p):
    # grid=() -> single invocation, whole (tiny) arrays resident in VMEM.
    return pl.pallas_call(
        prologue_kernel,
        out_shape=jax.ShapeDtypeStruct((ROWS, 4 * D), jnp.bfloat16),
    )(stacked, p['w2'], p['bbig'], p['fcw2'], p['fcb2'], qpack)


# ---------------- scoring kernel: one matmul + bias + 3 sigmoids per tile ----------------
def score_kernel(lhs_ref, etab_ref, bent_ref, out_ref):
    # (ROWS, 4D) bf16 @ (4D, TN) bf16 -> (ROWS, TN) f32 on the MXU.
    s = jnp.dot(lhs_ref[...], etab_ref[...], preferred_element_type=jnp.float32)
    s_conve = s[0:B, :] + bent_ref[...]
    s_cx    = s[B:2 * B, :]
    s_dm    = s[2 * B:3 * B, :]
    out_ref[...] = (jax.nn.sigmoid(s_conve) + jax.nn.sigmoid(s_cx)
                    + jax.nn.sigmoid(s_dm)) * (1.0 / 3.0)


def triple_e_score(lhs, p):
    # pl.cdiv keeps the grid robust if N_ENT is not a multiple of TN (each
    # output column depends only on its own entity row; padded columns' stores
    # are clipped, so garbage in padded table reads is harmless).
    return pl.pallas_call(
        score_kernel,
        out_shape=jax.ShapeDtypeStruct((B, N_ENT), jnp.float32),
        grid=(pl.cdiv(N_ENT, TN),),
        in_specs=[pl.BlockSpec((ROWS, 4 * D), lambda j: (0, 0)),   # LHS resident
                  pl.BlockSpec((4 * D, TN), lambda j: (0, j)),     # bf16 table tile
                  pl.BlockSpec((1, TN), lambda j: (0, j))],        # ConvE entity bias tile
        out_specs=pl.BlockSpec((B, TN), lambda j: (0, j)),
        compiler_params=pltpu.CompilerParams(dimension_semantics=("parallel",)),
    )(lhs, p['ent_fusedT'], p['b_ent2d'])


# ---------------- parameter setup ----------------
def build_params(key):
    ks = jax.random.split(key, 16)
    nrm = lambda k, s: jax.random.normal(k, s, dtype=jnp.float32) * 0.1
    p = {}
    # knowledge-graph embedding tables
    p['conve_ent'] = nrm(ks[2], (N_ENT, D))
    p['conve_rel'] = nrm(ks[3], (N_REL, D))
    p['cx_ent_re'] = nrm(ks[4], (N_ENT, D))
    p['cx_ent_im'] = nrm(ks[5], (N_ENT, D))
    p['cx_rel_re'] = nrm(ks[6], (N_REL, D))
    p['cx_rel_im'] = nrm(ks[7], (N_REL, D))
    p['dm_ent']    = nrm(ks[8], (N_ENT, D))
    p['dm_rel']    = nrm(ks[9], (N_REL, D))
    # ConvE parameters
    p['conv_w'] = nrm(ks[10], (COUT, KSZ, KSZ))
    p['conv_b'] = nrm(ks[11], (COUT,))
    p['fc_w']   = nrm(ks[12], (D, FEAT))
    p['fc_b']   = nrm(ks[13], (D,))
    p['b_ent']  = nrm(ks[14], (N_ENT,))

    # Conv-as-matmul: flattened stacked image (B, 2*D1*D2) @ W2 == conv2d('VALID')
    # with output column order c*HW + i*W_OUT + j matching torch's .view(-1, feat_dim).
    # bn0 (eval, default running stats) is a constant scale folded into W2.
    bn0_scale = 1.0 / np.sqrt(1.0 + BN_EPS)
    conv_w_np = np.asarray(p['conv_w'])
    w2 = np.zeros((2 * D1 * D2, FEAT), dtype=np.float32)
    for c in range(COUT):
        for i in range(H_OUT):
            for j in range(W_OUT):
                col = c * HW + i * W_OUT + j
                for ki in range(KSZ):
                    for kj in range(KSZ):
                        w2[(i + ki) * D2 + (j + kj), col] = conv_w_np[c, ki, kj] * bn0_scale
    p['w2']   = jnp.asarray(w2)
    p['bbig'] = jnp.asarray(np.repeat(np.asarray(p['conv_b']), HW))[None, :]
    # bn2 (eval, PyTorch defaults): gamma=1, beta=0, mean=0, var=1 -> scale/shift,
    # folded into the fc weights/bias (fewer kernel inputs, fewer VPU ops).
    gamma = jnp.ones((D,), jnp.float32); beta = jnp.zeros((D,), jnp.float32)
    mean  = jnp.zeros((D,), jnp.float32); var  = jnp.ones((D,), jnp.float32)
    inv = gamma / jnp.sqrt(var + BN_EPS)
    p['bn_scale'] = inv[None, :]
    p['bn_shift'] = (beta - mean * inv)[None, :]
    p['fcw2'] = p['fc_w'].T * inv[None, :]                      # (FEAT, D)
    p['fcb2'] = (p['fc_b'] * inv + p['bn_shift'][0])[None, :]   # (1, D)
    # Fused bf16 entity table [conve | cx_re | cx_im | dm], stored TRANSPOSED
    # as (4*D, N_ENT) so the scoring matmul is a plain (K, N) contraction
    # (no per-tile RHS transpose) and the output lane axis is the entity axis.
    # TODO(synk): int8 (v5e/v6e) / fp8 (v7x) per-row-scaled quantization of this
    # table halves HBM traffic again at deployment sizes.
    p['ent_fusedT'] = jnp.concatenate(
        [p['conve_ent'], p['cx_ent_re'], p['cx_ent_im'], p['dm_ent']],
        axis=1).T.astype(jnp.bfloat16)                          # (4*D, N_ENT)
    p['b_ent2d'] = p['b_ent'][None, :]
    return p


# ---------------- forward ----------------
def triple_e_forward(e1, r, p):
    # embedding lookups (EmbeddingDropout -> identity in eval)
    E1c, Rc = p['conve_ent'][e1], p['conve_rel'][r]
    # row-major flatten of the height-stacked (2*D1, D2) ConvE input image
    stacked = jnp.concatenate([E1c, Rc], axis=1)                           # (B, 2*D)
    # packed ComplEx / DistMult query embeddings: [e1_re | r_re | e1_im | r_im | e1_dm | r_dm]
    qpack = jnp.concatenate([p['cx_ent_re'][e1], p['cx_rel_re'][r],
                             p['cx_ent_im'][e1], p['cx_rel_im'][r],
                             p['dm_ent'][e1],    p['dm_rel'][r]], axis=1)  # (B, 6*D)
    lhs = build_lhs(stacked, qpack, p)        # one-shot Pallas prologue kernel
    return triple_e_score(lhs, p)             # tiled Pallas scoring kernel


# ---------------- pure-JAX reference (f32, for verification) ----------------
def reference(e1, r, p):
    E1c, Rc, E2c = p['conve_ent'][e1], p['conve_rel'][r], p['conve_ent']
    x = jnp.concatenate([E1c.reshape(B, 1, D1, D2), Rc.reshape(B, 1, D1, D2)], axis=2)
    x = x * (1.0 / np.sqrt(1.0 + BN_EPS))
    conv = jax.lax.conv_general_dilated(x, p['conv_w'][:, None], (1, 1), 'VALID',
                                        dimension_numbers=('NCHW', 'OIHW', 'NCHW'))
    conv = jnp.maximum(conv + p['conv_b'][None, :, None, None], 0.0)
    xf = conv.reshape(B, FEAT) @ p['fc_w'].T + p['fc_b']
    xf = jnp.maximum(xf * p['bn_scale'][0] + p['bn_shift'][0], 0.0)
    s_conve = jax.nn.sigmoid(xf @ E2c.T + p['b_ent'][None, :])
    e1r, e1i = p['cx_ent_re'][e1], p['cx_ent_im'][e1]
    rr, ri = p['cx_rel_re'][r], p['cx_rel_im'][r]
    s_cx = jax.nn.sigmoid((rr * e1r) @ p['cx_ent_re'].T + (rr * e1i) @ p['cx_ent_im'].T
                          + (ri * e1r) @ p['cx_ent_im'].T - (ri * e1i) @ p['cx_ent_re'].T)
    s_dm = jax.nn.sigmoid((p['dm_ent'][e1] * p['dm_rel'][r]) @ p['dm_ent'].T)
    return (s_conve + s_cx + s_dm) / 3.0


if __name__ == "__main__":
    key = jax.random.PRNGKey(0)
    ks = jax.random.split(key, 16)
    e1 = jax.random.randint(ks[0], (B,), 0, N_ENT)
    r = jax.random.randint(ks[1], (B,), 0, N_REL)
    params = build_params(key)

    fwd = jax.jit(triple_e_forward)      # gathers + both pallas_calls in one dispatch
    out = jax.block_until_ready(fwd(e1, r, params))

    ref = reference(e1, r, params)
    # tolerance covers the bf16 entity-table storage + bf16 LHS (f32 accumulation)
    np.testing.assert_allclose(np.asarray(out), np.asarray(ref), rtol=1e-3, atol=1e-3)
    print("KERNEL_OK")
</pallas_src>

<mosaic_0001>
module attributes {stable_mosaic.version = 11 : i64} {
  func.func @prologue_kernel(%arg0: memref<2x64xf32, #tpu.memory_space<vmem>>, %arg1: memref<64x144xf32, #tpu.memory_space<vmem>>, %arg2: memref<1x144xf32, #tpu.memory_space<vmem>>, %arg3: memref<144x32xf32, #tpu.memory_space<vmem>>, %arg4: memref<1x32xf32, #tpu.memory_space<vmem>>, %arg5: memref<2x192xf32, #tpu.memory_space<vmem>>, %arg6: memref<8x128xbf16, #tpu.memory_space<vmem>>) attributes {dimension_semantics = [], scalar_prefetch = 0 : i64, scratch_operands = 0 : i64, tpu.core_type = #tpu.core_type<tc>} {
    %c0 = arith.constant 0 : index
    %c0_0 = arith.constant 0 : index
    %0 = vector.load %arg0[%c0, %c0_0] : memref<2x64xf32, #tpu.memory_space<vmem>>, vector<2x64xf32>
    %c0_1 = arith.constant 0 : index
    %c0_2 = arith.constant 0 : index
    %1 = vector.load %arg1[%c0_1, %c0_2] : memref<64x144xf32, #tpu.memory_space<vmem>>, vector<64x144xf32>
    %cst = arith.constant dense<0.000000e+00> : vector<2x144xf32>
    %2 = tpu.matmul %0, %1, %cst {dimension_numbers = #tpu.dot_dimension_numbers<[1], [0], [0], [1], [0, 0, 1, 1], [], []>} : vector<2x64xf32>, vector<64x144xf32>, vector<2x144xf32> -> vector<2x144xf32>
    %c0_3 = arith.constant 0 : index
    %c0_4 = arith.constant 0 : index
    %3 = vector.load %arg2[%c0_3, %c0_4] : memref<1x144xf32, #tpu.memory_space<vmem>>, vector<1x144xf32>
    %4 = vector.broadcast %3 : vector<1x144xf32> to vector<2x144xf32>
    %5 = arith.addf %2, %4 : vector<2x144xf32>
    %cst_5 = arith.constant 0.000000e+00 : f32
    %6 = vector.broadcast %cst_5 : f32 to vector<2x144xf32>
    %7 = arith.maximumf %5, %6 : vector<2x144xf32>
    %c0_6 = arith.constant 0 : index
    %c0_7 = arith.constant 0 : index
    %8 = vector.load %arg3[%c0_6, %c0_7] : memref<144x32xf32, #tpu.memory_space<vmem>>, vector<144x32xf32>
    %cst_8 = arith.constant dense<0.000000e+00> : vector<2x32xf32>
    %9 = tpu.matmul %7, %8, %cst_8 {dimension_numbers = #tpu.dot_dimension_numbers<[1], [0], [0], [1], [0, 0, 1, 1], [], []>} : vector<2x144xf32>, vector<144x32xf32>, vector<2x32xf32> -> vector<2x32xf32>
    %c0_9 = arith.constant 0 : index
    %c0_10 = arith.constant 0 : index
    %10 = vector.load %arg4[%c0_9, %c0_10] : memref<1x32xf32, #tpu.memory_space<vmem>>, vector<1x32xf32>
    %11 = vector.broadcast %10 : vector<1x32xf32> to vector<2x32xf32>
    %12 = arith.addf %9, %11 : vector<2x32xf32>
    %cst_11 = arith.constant 0.000000e+00 : f32
    %13 = vector.broadcast %cst_11 : f32 to vector<2x32xf32>
    %14 = arith.maximumf %12, %13 : vector<2x32xf32>
    %c0_12 = arith.constant 0 : index
    %c0_13 = arith.constant 0 : index
    %15 = vector.load %arg5[%c0_12, %c0_13] : memref<2x192xf32, #tpu.memory_space<vmem>>, vector<2x192xf32>
    %16 = vector.extract_strided_slice %15 {offsets = [0, 0], sizes = [2, 32], strides = [1, 1]} : vector<2x192xf32> to vector<2x32xf32>
    %17 = vector.extract_strided_slice %15 {offsets = [0, 32], sizes = [2, 32], strides = [1, 1]} : vector<2x192xf32> to vector<2x32xf32>
    %18 = vector.extract_strided_slice %15 {offsets = [0, 64], sizes = [2, 32], strides = [1, 1]} : vector<2x192xf32> to vector<2x32xf32>
    %19 = vector.extract_strided_slice %15 {offsets = [0, 96], sizes = [2, 32], strides = [1, 1]} : vector<2x192xf32> to vector<2x32xf32>
    %20 = vector.extract_strided_slice %15 {offsets = [0, 128], sizes = [2, 32], strides = [1, 1]} : vector<2x192xf32> to vector<2x32xf32>
    %21 = vector.extract_strided_slice %15 {offsets = [0, 160], sizes = [2, 32], strides = [1, 1]} : vector<2x192xf32> to vector<2x32xf32>
    %22 = arith.mulf %17, %16 : vector<2x32xf32>
    %23 = arith.mulf %19, %18 : vector<2x32xf32>
    %24 = arith.subf %22, %23 : vector<2x32xf32>
    %25 = arith.mulf %17, %18 : vector<2x32xf32>
    %26 = arith.mulf %19, %16 : vector<2x32xf32>
    %27 = arith.addf %25, %26 : vector<2x32xf32>
    %28 = arith.mulf %20, %21 : vector<2x32xf32>
    %cst_14 = arith.constant 0.000000e+00 : f32
    %29 = vector.broadcast %cst_14 : f32 to vector<2x32xf32>
    %30 = tpu.concatenate %14, %29, %29, %29 in 1 : vector<2x32xf32>, vector<2x32xf32>, vector<2x32xf32>, vector<2x32xf32> -> vector<2x128xf32>
    %31 = tpu.concatenate %29, %24, %27, %29 in 1 : vector<2x32xf32>, vector<2x32xf32>, vector<2x32xf32>, vector<2x32xf32> -> vector<2x128xf32>
    %32 = tpu.concatenate %29, %29, %29, %28 in 1 : vector<2x32xf32>, vector<2x32xf32>, vector<2x32xf32>, vector<2x32xf32> -> vector<2x128xf32>
    %cst_15 = arith.constant 0.000000e+00 : f32
    %33 = vector.broadcast %cst_15 : f32 to vector<2x128xf32>
    %34 = tpu.concatenate %30, %31, %32, %33 in 0 : vector<2x128xf32>, vector<2x128xf32>, vector<2x128xf32>, vector<2x128xf32> -> vector<8x128xf32>
    %35 = arith.truncf %34 : vector<8x128xf32> to vector<8x128xbf16>
    %c0_16 = arith.constant 0 : index
    %c0_17 = arith.constant 0 : index
    %36 = vector.load %arg6[%c0_16, %c0_17] : memref<8x128xbf16, #tpu.memory_space<vmem>>, vector<8x128xbf16>
    tpu.vector_store %arg6[%c0_16, %c0_17], %35 {strides = array<i32>} : memref<8x128xbf16, #tpu.memory_space<vmem>>, vector<8x128xbf16>,
    return
  }
}

module attributes {stable_mosaic.version = 11 : i64} {
  func.func @score_kernel(%arg0: i32, %arg1: memref<8x128xbf16, #tpu.memory_space<vmem>>, %arg2: memref<128x256xbf16, #tpu.memory_space<vmem>>, %arg3: memref<1x256xf32, #tpu.memory_space<vmem>>, %arg4: memref<2x256xf32, #tpu.memory_space<vmem>>) attributes {dimension_semantics = [#tpu.dimension_semantics<parallel>], iteration_bounds = array<i64: 1>, scalar_prefetch = 0 : i64, scratch_operands = 0 : i64, tpu.core_type = #tpu.core_type<tc>, window_params = [{pipeline_mode = #tpu.pipeline_mode<synchronous>, transform_indices = @transform_0, window_bounds = array<i64: 8, 128>}, {transform_indices = @transform_1, window_bounds = array<i64: 128, 256>}, {transform_indices = @transform_2, window_bounds = array<i64: 1, 256>}, {transform_indices = @transform_3, window_bounds = array<i64: 2, 256>}]} {
    %c0 = arith.constant 0 : index
    %c0_0 = arith.constant 0 : index
    %0 = vector.load %arg1[%c0, %c0_0] : memref<8x128xbf16, #tpu.memory_space<vmem>>, vector<8x128xbf16>
    %c0_1 = arith.constant 0 : index
    %c0_2 = arith.constant 0 : index
    %1 = vector.load %arg2[%c0_1, %c0_2] : memref<128x256xbf16, #tpu.memory_space<vmem>>, vector<128x256xbf16>
    %cst = arith.constant dense<0.000000e+00> : vector<8x256xf32>
    %2 = tpu.matmul %0, %1, %cst {dimension_numbers = #tpu.dot_dimension_numbers<[1], [0], [0], [1], [0, 0, 1, 1], [], []>} : vector<8x128xbf16>, vector<128x256xbf16>, vector<8x256xf32> -> vector<8x256xf32>
    %3 = vector.extract_strided_slice %2 {offsets = [0, 0], sizes = [2, 256], strides = [1, 1]} : vector<8x256xf32> to vector<2x256xf32>
    %c0_3 = arith.constant 0 : index
    %c0_4 = arith.constant 0 : index
    %4 = vector.load %arg3[%c0_3, %c0_4] : memref<1x256xf32, #tpu.memory_space<vmem>>, vector<1x256xf32>
    %5 = vector.broadcast %4 : vector<1x256xf32> to vector<2x256xf32>
    %6 = arith.addf %3, %5 : vector<2x256xf32>
    %7 = vector.extract_strided_slice %2 {offsets = [2, 0], sizes = [2, 256], strides = [1, 1]} : vector<8x256xf32> to vector<2x256xf32>
    %8 = vector.extract_strided_slice %2 {offsets = [4, 0], sizes = [2, 256], strides = [1, 1]} : vector<8x256xf32> to vector<2x256xf32>
    %9 = arith.negf %6 : vector<2x256xf32>
    %10 = math.exp %9 : vector<2x256xf32>
    %cst_5 = arith.constant 1.000000e+00 : f32
    %11 = vector.broadcast %cst_5 : f32 to vector<2x256xf32>
    %12 = arith.addf %11, %10 : vector<2x256xf32>
    %13 = arith.divf %11, %12 : vector<2x256xf32>
    %14 = arith.negf %7 : vector<2x256xf32>
    %15 = math.exp %14 : vector<2x256xf32>
    %cst_6 = arith.constant 1.000000e+00 : f32
    %16 = vector.broadcast %cst_6 : f32 to vector<2x256xf32>
    %17 = arith.addf %16, %15 : vector<2x256xf32>
    %18 = arith.divf %16, %17 : vector<2x256xf32>
    %19 = arith.addf %13, %18 : vector<2x256xf32>
    %20 = arith.negf %8 : vector<2x256xf32>
    %21 = math.exp %20 : vector<2x256xf32>
    %cst_7 = arith.constant 1.000000e+00 : f32
    %22 = vector.broadcast %cst_7 : f32 to vector<2x256xf32>
    %23 = arith.addf %22, %21 : vector<2x256xf32>
    %24 = arith.divf %22, %23 : vector<2x256xf32>
    %25 = arith.addf %19, %24 : vector<2x256xf32>
    %cst_8 = arith.constant 0.333333343 : f32
    %26 = vector.broadcast %cst_8 : f32 to vector<2x256xf32>
    %27 = arith.mulf %25, %26 : vector<2x256xf32>
    %c0_9 = arith.constant 0 : index
    %c0_10 = arith.constant 0 : index
    %28 = vector.load %arg4[%c0_9, %c0_10] : memref<2x256xf32, #tpu.memory_space<vmem>>, vector<2x256xf32>
    tpu.vector_store %arg4[%c0_9, %c0_10], %27 {strides = array<i32>} : memref<2x256xf32, #tpu.memory_space<vmem>>, vector<2x256xf32>,
    return
  }
  func.func @transform_0(%arg0: i32) -> (i32, i32) {
    %c0_i32 = arith.constant 0 : i32
    %c0_i32_0 = arith.constant 0 : i32
    %c0_i32_1 = arith.constant 0 : i32
    return %c0_i32, %c0_i32_0 : i32, i32
  }
  func.func @transform_1(%arg0: i32) -> (i32, i32) {
    %c0_i32 = arith.constant 0 : i32
    %c0_i32_0 = arith.constant 0 : i32
    return %c0_i32, %arg0 : i32, i32
  }
  func.func @transform_2(%arg0: i32) -> (i32, i32) {
    %c0_i32 = arith.constant 0 : i32
    %c0_i32_0 = arith.constant 0 : i32
    return %c0_i32, %arg0 : i32, i32
  }
  func.func @transform_3(%arg0: i32) -> (i32, i32) {
    %c0_i32 = arith.constant 0 : i32
    %c0_i32_0 = arith.constant 0 : i32
    return %c0_i32, %arg0 : i32, i32
  }
}

</mosaic_0001>

<bundles_post_ra>
// kernel: triple_e_forward.3
= control target key start
LH: loop header
LB: loop body
LE: loop exit
PB: predicated region body
PF: predicated region fallthrough
CT: control target
= control target key end

     0   :  { %v321_v2 = vmov 0   ;;  %s409_s0 = inlined_call_operand.vmem [shape: bf16[8,128], index: 0, kind: input, shape index: {}]   ;;  %s410_s1 = inlined_call_operand.vmem [shape: bf16[128,256], index: 1, kind: input, shape index: {}]   ;;  %s411_s2 = inlined_call_operand.vmem [shape: f32[1,256], index: 2, kind: input, shape index: {}]   ;;  %s412_s3 = inlined_call_operand.hbm [shape: f32[2,256], index: 3, kind: output, shape index: {}]  }
   0x1   :  { %v257_v0 = vld [vmem:[%s410_s1 + $0x4] ss:$8 sps:$4 sm:$0xff]   ;;  %v259_v1 = vld [vmem:[%s410_s1] ss:$8 sps:$4 sm:$0xff]   ;;  %145 = vmatprep.mubr.bf16.mxu0 %v321_v2  ;;  %v260_v3 = vld [vmem:[%s410_s1 + $0x14] ss:$8 sps:$4 sm:$0xff]  }
   0x2   :  { %113 = vmatprep.subr.bf16.mxu0 %v257_v0  ;;  %v262_v4 = vld [vmem:[%s410_s1 + $0x10] ss:$8 sps:$4 sm:$0xff]   ;;  %v263_v5 = vld [vmem:[%s410_s1 + $0x24] ss:$8 sps:$4 sm:$0xff]   ;;  %v265_v6 = vld [vmem:[%s410_s1 + $0x20] ss:$8 sps:$4 sm:$0xff]  }
   0x3   :  { %114 = vmatpush1.bf16.msra.mxu0 %v259_v1  ;;  %v266_v7 = vld [vmem:[%s410_s1 + $0x34] ss:$8 sps:$4 sm:$0xff]   ;;  %v268_v8 = vld [vmem:[%s410_s1 + $0x30] ss:$8 sps:$4 sm:$0xff]  }
   0x4   :  { %115 = vmatprep.subr.bf16.mxu0 %v260_v3 }
   0x7   :  { %116 = vmatpush1.bf16.msra.mxu0 %v262_v4 }
   0x8   :  { %117 = vmatprep.subr.bf16.mxu0 %v263_v5 }
   0xb   :  { %118 = vmatpush1.bf16.msra.mxu0 %v265_v6 }
   0xc   :  { %8 = vsyncpa [#allocation3], 0  ;;  %119 = vmatprep.subr.bf16.mxu0 %v266_v7  ;;  %v269_v9 = vld [vmem:[%s410_s1 + $0x44] ss:$8 sps:$4 sm:$0xff]   ;;  %v271_v10 = vld [vmem:[%s410_s1 + $0x40] ss:$8 sps:$4 sm:$0xff]   ;;  %v156_v18 = vlaneseq }
   0xd   :  { %v272_v11 = vld [vmem:[%s410_s1 + $0x54] ss:$8 sps:$4 sm:$0xff]   ;;  %v274_v12 = vld [vmem:[%s410_s1 + $0x50] ss:$8 sps:$4 sm:$0xff]   ;;  %v275_v13 = vld [vmem:[%s410_s1 + $0x64] ss:$8 sps:$4 sm:$0xff]  }
   0xe   :  { %v277_v14 = vld [vmem:[%s410_s1 + $0x60] ss:$8 sps:$4 sm:$0xff]   ;;  %v278_v15 = vld [vmem:[%s410_s1 + $0x74] ss:$8 sps:$4 sm:$0xff]   ;;  %v280_v16 = vld [vmem:[%s410_s1 + $0x70] ss:$8 sps:$4 sm:$0xff]  }
   0xf   :  { %120 = vmatpush1.bf16.msra.mxu0 %v268_v8  ;;  %v16_v17 = vld [vmem:[%s409_s0] sm:$0xf]  ;;  %v157_v19 = vshrl.u32 %v156_v18, 7  ;;  %s322_s0 = smov [#allocation2]  }
  0x10   :  { %121 = vmatprep.subr.bf16.mxu0 %v269_v9  ;;  %v154_v21 = vld [vmem:[%s411_s2] sm:$0x3]  ;;  %s226_s1 = sshll.u32 %s322_s0, 4  ;;  %s227_s1 = int_to_ptr.vmem [resolvable:$true] %s226_s1 }
  0x11   :  { %v158_v20 = vsub.s32 0, %v157_v19  ;;  %v162_v22 = vsub.s32 1, %v157_v19  ;;  %s297_s2 = scalar_lea.vmem %s227_s1, 64  ;;  %p302_p1 = scmp.lt.s32.totalorder %s227_s1, %s227_s1 }
  0x12   :  { %p298_p0 = scmp.ne.s32.totalorder %s227_s1, %s297_s2  ;;  %p303_p2 = scmp.lt.s32.totalorder %s297_s2, %s297_s2 }
  0x13   :  { %122 = vmatpush1.bf16.msra.mxu0 %v271_v10  ;;  %v159_v23 = vrot.slane %v154_v21, %v158_v20  ;;  %v163_v24 = vrot.slane %v154_v21, %v162_v22 }
  0x14   :  { %123 = vmatprep.subr.bf16.mxu0 %v272_v11  ;;  %p304_p3 = por %p303_p2, %p302_p1 }
  0x16   :  { %p305_p4 = pnand %p304_p3, %p298_p0 }
  0x17   :  { %124 = vmatpush1.bf16.msra.mxu0 %v274_v12 }
  0x18   :  { %125 = vmatprep.subr.bf16.mxu0 %v275_v13 }
  0x1b   :  { %126 = vmatpush1.bf16.msra.mxu0 %v277_v14 }
  0x1c   :  { %127 = vmatprep.subr.bf16.mxu0 %v278_v15 }
  0x1f   :  { %128 = vmatpush1.bf16.msra.mxu0 %v280_v16 }
  0x22   :  { %146 = vmatmul.mubr.bf16.vlgmr.msra.gmra.mrb[0].mxu0 %v16_v17 }
  0xf5   :  { %v147_v25 = vpop.f32.mrb[0].mxu0 }
  0xf6   :  { %v166_v26 = vadd.f32 %v159_v23, %v147_v25  ;;  %v252_v27 = vmul.f32 -1.442695, %v147_v25  ;;  %v149_v28 = vpop.f32.mrb[1].mxu0 }
  0xf7   :  { %v167_v29 = vadd.f32 %v163_v24, %v149_v28  ;;  %v253_v30 = vmul.f32 -1.442695, %v149_v28  ;;  %v151_v31 = vpop.f32.mrb[2].mxu0 }
  0xf8   :  { %v250_v32 = vmul.f32 -1.442695, %v166_v26  ;;  %281 = vpow2.f32 %v252_v27  ;;  %v152_v33 = vpop.f32.mrb[3].mxu0 }
  0xf9   :  { %v251_v34 = vmul.f32 -1.442695, %v167_v29  ;;  %283 = vpow2.f32 %v253_v30 }
  0xfa   :  { %285 = vpow2.f32 %v250_v32 }
  0xfb   :  { %287 = vpow2.f32 %v251_v34 }
 0x102   :  { %v282_v35 = vpop.eup %281 }
 0x103   :  { %v284_v36 = vpop.eup %283  ;;  %v186_v37 = vadd.f32 1.0, %v282_v35 }
 0x104   :  { %v286_v38 = vpop.eup %285  ;;  %v187_v39 = vadd.f32 1.0, %v284_v36 }
 0x105   :  { %v288_v40 = vpop.eup %287  ;;  %v174_v41 = vadd.f32 1.0, %v286_v38  ;;  %289 = vrcp.f32 %v186_v37 }
 0x106   :  { %v175_v42 = vadd.f32 1.0, %v288_v40  ;;  %291 = vrcp.f32 %v187_v39 }
 0x107   :  { %293 = vrcp.f32 %v174_v41 }
 0x108   :  { %295 = vrcp.f32 %v175_v42 }
 0x10f   :  { %v290_v43 = vpop.eup %289 }
 0x110   :  { %v292_v44 = vpop.eup %291  ;;  %v194_v45 = vrot.slane %v290_v43, 2  ;;  %v200_v50 = vrot.slane %v290_v43, 4 }
 0x111   :  { %v294_v46 = vpop.eup %293  ;;  %v195_v47 = vrot.slane %v292_v44, 2  ;;  %v201_v52 = vrot.slane %v292_v44, 4 }
 0x112   :  { %v296_v48 = vpop.eup %295  ;;  %v198_v49 = vadd.f32 %v294_v46, %v194_v45 }
 0x113   :  { %v199_v51 = vadd.f32 %v296_v48, %v195_v47 }
 0x114   :  { %v204_v53 = vadd.f32 %v200_v50, %v198_v49 }
 0x115   :  { %v205_v54 = vadd.f32 %v201_v52, %v199_v51 }
 0x116   :  { %v206_v55 = vmul.f32 0.33333334, %v204_v53 }
 0x117   :  { %v207_v56 = vmul.f32 0.33333334, %v205_v54 }
 0x119   :  { %v210_v57 = vcombine.low %v206_v55, %v207_v56 }
 0x11b   :  { %254 = vst.sshfl [vmem:[#allocation2] sm:$0x33 pattern:$0x76325410] %v210_v57 }
 0x11c   :  { %308 = shalt.err (!%p305_p4)
}
 0x11d   :  { %s309_s23 = scalar_lea.hbm %s412_s3, 64 }
 0x11e   :  { %p310_p5 = scmp.ne.s32.totalorder %s412_s3, %s309_s23  ;;  %p313_p6 = scmp.lt.u32.totalorder %s309_s23, %s412_s3 }
 0x120   :  { %p315_p7 = pnand %p313_p6, %p310_p5 }
 0x122   :  { %318 = shalt.err (!%p315_p7)
}
 0x123   :  { %229 = dma.vmem_to_hbm [thread:$0]  %s227_s1, 64, %s412_s3, [#allocation3]  }
 0x124   :  { %319 = dma.done.wait [#allocation3], 64  }
 0x125   :  { %320 = vsyncadd [#allocation3], 4294967232 }
 0x126   :  { %233 = vsyncpa [#allocation3], 1 }

// kernel: triple_e_forward.2
= control target key start
LH: loop header
LB: loop body
LE: loop exit
PB: predicated region body
PF: predicated region fallthrough
CT: control target
= control target key end

     0   :  { %v355_v3 = vmov 0.0   ;;  %v356_v4 = vmov 0.0|0.0   ;;  %s357_s27 = smov 96   ;;  %vm52_vm0 = vcmask 523264   ;;  %v42_v55 = vlaneseq  ;;  %s360_s20 = smov 64   ;;  %s536_s5 = inlined_call_operand.vmem [shape: f32[2,192], index: 5, kind: input, shape index: {}]   ;;  %s537_s1 = inlined_call_operand.vmem [shape: f32[64,144], index: 1, kind: input, shape index: {}]   ;;  %s538_s3 = inlined_call_operand.vmem [shape: f32[144,32], index: 3, kind: input, shape index: {}]   ;;  %s539_s0 = inlined_call_operand.vmem [shape: f32[2,64], index: 0, kind: input, shape index: {}]   ;;  %s540_s2 = inlined_call_operand.vmem [shape: f32[1,144], index: 2, kind: input, shape index: {}]   ;;  %s541_s4 = inlined_call_operand.vmem [shape: f32[1,32], index: 4, kind: input, shape index: {}]   ;;  %s542_s6 = inlined_call_operand.vmem [shape: bf16[8,128], index: 6, kind: output, shape index: {}]  }
   0x1   :  { %v399_v0 = vld [vmem:[%s536_s5] sm:$0xf]  ;;  %v25_v1 = vld [vmem:[%s537_s1 + $0x8] sm:$0xff]  ;;  %v27_v2 = vld [vmem:[%s537_s1 + $0x18] sm:$0xff]  ;;  %120 = vmatprep.mubr.f32.mxu0 %v355_v3  ;;  %322 = vmatprep.subr.bf16.mxu1 %v356_v4  ;;  %s358_s5 = smov 32   ;;  %vm154_vm1 = vcmask 130048  }
   0x2   :  { %240 = vrot.lane.b32.xlu0 %v399_v0, %s357_s27  ;;  %v306_v5 = vpack.c.bf16 %v27_v2, %v25_v1  ;;  %v24_v6 = vld [vmem:[%s537_s1] sm:$0xff]  ;;  %v26_v7 = vld [vmem:[%s537_s1 + $0x10] sm:$0xff]  ;;  %v29_v8 = vld [vmem:[%s537_s1 + $0x28] sm:$0xff]  ;;  %v359_v56 = vmov 1983009808   ;;  %v249_v58 = vrot.slane %v399_v0, 2 }
   0x3   :  { %v308_v9 = vpack.c.bf16 %v26_v7, %v24_v6  ;;  %v31_v10 = vld [vmem:[%s537_s1 + $0x38] sm:$0xff]  ;;  %v28_v11 = vld [vmem:[%s537_s1 + $0x20] sm:$0xff]  ;;  %v30_v12 = vld [vmem:[%s537_s1 + $0x30] sm:$0xff]  ;;  %v261_v57 = vunpack.c.l.s4 %v359_v56  ;;  %v43_v59 = vshrl.u32 %v42_v55, 7  ;;  %vm254_vm2 = vcmask 261120  }
   0x4   :  { %307 = vmatprep.subr.bf16.mxu0 %v306_v5  ;;  %v310_v13 = vpack.c.bf16 %v31_v10, %v29_v8  ;;  %v33_v14 = vld [vmem:[%s537_s1 + $0x48] sm:$0xff]  ;;  %v35_v15 = vld [vmem:[%s537_s1 + $0x58] sm:$0xff]  ;;  %v312_v16 = vpack.c.bf16 %v30_v12, %v28_v11  ;;  %v32_v17 = vld [vmem:[%s537_s1 + $0x40] sm:$0xff]  ;;  %vm257_vm3 = vcmask 785408   ;;  %vm291_vm4 = vcmask 1041408  }
   0x5   :  { %309 = vmatpush1.bf16.msra.mxu0 %v308_v9  ;;  %v314_v18 = vpack.c.bf16 %v35_v15, %v33_v14  ;;  %v34_v19 = vld [vmem:[%s537_s1 + $0x50] sm:$0xff]  ;;  %v37_v20 = vld [vmem:[%s537_s1 + $0x68] sm:$0xff]  ;;  %v39_v21 = vld [vmem:[%s537_s1 + $0x78] sm:$0xff]  ;;  %v262_v60 = vunpack.c.0.s8 %v261_v57  ;;  %v44_v6 = vsub.s32 0, %v43_v59  ;;  %v48_v8 = vsub.s32 1, %v43_v59 }
   0x6   :  { %311 = vmatprep.subr.bf16.mxu0 %v310_v13  ;;  %231 = vrot.lane.b32.xlu0 %v399_v0, %s358_s5  ;;  %v129_v22 = vld [vmem:[%s538_s3] sm:$0xff]  ;;  %v130_v23 = vld [vmem:[%s538_s3 + $0x8] sm:$0xff]  ;;  %v131_v24 = vld [vmem:[%s538_s3 + $0x10] sm:$0xff]  ;;  %v316_v27 = vpack.c.bf16 %v34_v19, %v32_v17  ;;  %v318_v28 = vpack.c.bf16 %v39_v21, %v37_v20  ;;  %vm293_vm5 = vcmask 1043456   ;;  %vm295_vm6 = vcmask 1045504  }
   0x7   :  { %v323_v25 = vpack.c.bf16 %v130_v23, %v129_v22  ;;  %v132_v26 = vld [vmem:[%s538_s3 + $0x18] sm:$0xff]  ;;  %v36_v29 = vld [vmem:[%s537_s1 + $0x60] sm:$0xff]  ;;  %v38_v30 = vld [vmem:[%s537_s1 + $0x70] sm:$0xff]  ;;  %v265_v2 = vsub.s32 %v262_v60, %v43_v59 }
   0x8   :  { %v326_v31 = vpack.c.bf16 %v132_v26, %v131_v24  ;;  %v133_v32 = vld [vmem:[%s538_s3 + $0x20] sm:$0xff]  ;;  %v134_v33 = vld [vmem:[%s538_s3 + $0x28] sm:$0xff]  ;;  %v320_v34 = vpack.c.bf16 %v38_v30, %v36_v29  ;;  %v135_v36 = vld [vmem:[%s538_s3 + $0x30] sm:$0xff] }
   0x9   :  { %313 = vmatpush1.bf16.msra.mxu0 %v312_v16  ;;  %324 = vmatpush1.bf16.msra.mxu1 %v323_v25  ;;  %v329_v35 = vpack.c.bf16 %v134_v33, %v133_v32  ;;  %v136_v37 = vld [vmem:[%s538_s3 + $0x38] sm:$0xff]  ;;  %v23_v38 = vld [vmem:[%s539_s0] sm:$0x3]  ;;  %v138_v41 = vld [vmem:[%s538_s3 + $0x48] sm:$0xff] }
   0xa   :  { %315 = vmatprep.subr.bf16.mxu0 %v314_v18  ;;  %325 = vmatprep.subr.bf16.mxu1 %v356_v4  ;;  %v332_v39 = vpack.c.bf16 %v136_v37, %v135_v36  ;;  %v137_v40 = vld [vmem:[%s538_s3 + $0x40] sm:$0xff]  ;;  %v139_v43 = vld [vmem:[%s538_s3 + $0x50] sm:$0xff]  ;;  %v140_v44 = vld [vmem:[%s538_s3 + $0x58] sm:$0xff] }
   0xb   :  { %v335_v42 = vpack.c.bf16 %v138_v41, %v137_v40  ;;  %v338_v45 = vpack.c.bf16 %v140_v44, %v139_v43  ;;  %v141_v46 = vld [vmem:[%s538_s3 + $0x60] sm:$0xff]  ;;  %v142_v47 = vld [vmem:[%s538_s3 + $0x68] sm:$0xff]  ;;  %v143_v49 = vld [vmem:[%s538_s3 + $0x70] sm:$0xff] }
   0xc   :  { %v341_v48 = vpack.c.bf16 %v142_v47, %v141_v46  ;;  %v144_v50 = vld [vmem:[%s538_s3 + $0x78] sm:$0xff]  ;;  %v145_v52 = vld [vmem:[%s538_s3 + $0x80] sm:$0xff]  ;;  %v146_v53 = vld [vmem:[%s538_s3 + $0x88] sm:$0xff] }
   0xd   :  { %317 = vmatpush1.bf16.msra.mxu0 %v316_v27  ;;  %327 = vmatpush1.bf16.msra.mxu1 %v326_v31  ;;  %v344_v51 = vpack.c.bf16 %v144_v50, %v143_v49  ;;  %v347_v54 = vpack.c.bf16 %v146_v53, %v145_v52  ;;  %v40_v7 = vld [vmem:[%s540_s2] sm:$0x3] }
   0xe   :  { %319 = vmatprep.subr.bf16.mxu0 %v318_v28  ;;  %328 = vmatprep.subr.bf16.mxu1 %v356_v4  ;;  %v45_v9 = vrot.slane %v40_v7, %v44_v6  ;;  %v49_v10 = vrot.slane %v40_v7, %v48_v8  ;;  %v304_v22 = vld [vmem:[%s541_s4] ss:$0 sm:$0xff] }
  0x11   :  { %321 = vmatpush1.bf16.msra.mxu0 %v320_v34  ;;  %330 = vmatpush1.bf16.msra.mxu1 %v329_v35 }
  0x12   :  { %331 = vmatprep.subr.bf16.mxu1 %v356_v4 }
  0x14   :  { %303 = vmatmul.mubr.msk.f32.vlgmr.msra.gmra.mrb[0].mxu0 %vm52_vm0, %v23_v38 }
  0x15   :  { %333 = vmatpush1.bf16.msra.mxu1 %v332_v39 }
  0x16   :  { %334 = vmatprep.subr.bf16.mxu1 %v356_v4 }
  0x19   :  { %336 = vmatpush1.bf16.msra.mxu1 %v335_v42 }
  0x1a   :  { %337 = vmatprep.subr.bf16.mxu1 %v356_v4 }
  0x1d   :  { %339 = vmatpush1.bf16.msra.mxu1 %v338_v45 }
  0x1e   :  { %340 = vmatprep.subr.bf16.mxu1 %v356_v4 }
  0x21   :  { %342 = vmatpush1.bf16.msra.mxu1 %v341_v48 }
  0x22   :  { %343 = vmatprep.subr.bf16.mxu1 %v356_v4 }
  0x25   :  { %345 = vmatpush1.bf16.msra.mxu1 %v344_v51 }
  0x26   :  { %346 = vmatprep.subr.bf16.mxu1 %v356_v4 }
  0x29   :  { %348 = vmatpush1.bf16.msra.mxu1 %v347_v54 }
  0x74   :  { %v241_v61 = vpop.permute.xlu0 %240 }
  0x75   :  { %v251_v62 = vrot.slane %v241_v61, 2  ;;  %v243_v63 = vmul.f32 %v241_v61, %v399_v0 }
  0x77   :  { %v253_v1 = vmul.f32 %v251_v62, %v249_v58  ;;  %245 = vrot.lane.b32.xlu1 %v243_v63, %s360_s20 }
  0x78   :  { %v232_v3 = vpop.permute.xlu0 %231 }
  0x79   :  { %v234_v4 = vmul.f32 %v232_v3, %v399_v0  ;;  %v280_v5 = vrot.slane %v253_v1, %v265_v2 }
  0x7b   :  { %236 = vrot.lane.b32.xlu1 %v234_v4, %s360_s20 }
  0x7f   :  { %281 = vrot.lane.b32.xlu1 %v280_v5, %s357_s27 }
  0xe7   :  { %v122_v11 = vpop.f32.mrb[0].mxu0 }
  0xe8   :  { %v123_v12 = vadd.f32 %v122_v11, %v45_v9  ;;  %v124_v13 = vpop.f32.mrb[1].mxu0 }
  0xe9   :  { %v125_v14 = vadd.f32 %v124_v13, %v49_v10  ;;  %v246_v15 = vpop.permute.xlu1 %245 }
  0xea   :  { %v248_v16 = vadd.f32 %v246_v15, %v243_v63  ;;  %v127_v17 = vmax.f32 %v123_v12, 0.0 }
  0xeb   :  { %v128_v0 = vmax.f32 %v125_v14, 0.0 }
  0xec   :  { %v266_v18 = vrot.slane %v248_v16, %v265_v2 }
  0xed   :  { %305 = vmatprep.mubr.msk.f32.mxu1 %vm154_vm1, %v128_v0  ;;  %v237_v19 = vpop.permute.xlu1 %236 }
  0xee   :  { %267 = vrot.lane.b32.xlu0 %v266_v18, %s358_s5  ;;  %223 = vmatmul.mubr.f32.vlgmr.msra.gmra.mrb[0].mxu1 %v127_v17  ;;  %v239_v20 = vsub.f32 %v234_v4, %v237_v19 }
  0xf0   :  { %v270_v23 = vsel %vm254_vm2, 0.0, %v239_v20 }
  0xf1   :  { %v282_v26 = vpop.permute.xlu1 %281 }
  0xf2   :  { %v284_v31 = vsel %vm257_vm3, 0.0, %v282_v26 }
  0xf3   :  { %v289_v35 = vrot.slane %v284_v31, 4 }
 0x160   :  { %v268_v21 = vpop.permute.xlu0 %267 }
 0x161   :  { %v271_v24 = vsel %vm52_vm0, %v270_v23, %v268_v21 }
 0x162   :  { %v272_v29 = vsel %vm257_vm3, %v271_v24, 0.0 }
 0x163   :  { %v286_v33 = vrot.slane %v272_v29, 6 }
 0x1c1   :  { %v224_v25 = vpop.f32.mrb[0].mxu1 }
 0x1c2   :  { %v225_v27 = vadd.f32 %v304_v22, %v224_v25  ;;  %v226_v28 = vpop.f32.mrb[1].mxu1 }
 0x1c4   :  { %v228_v30 = vmax.f32 %v225_v27, 0.0 }
 0x1c6   :  { %v255_v32 = vsel %vm254_vm2, %v228_v30, 0.0 }
 0x1c7   :  { %v256_v34 = vsel %vm52_vm0, %v255_v32, 0.0 }
 0x1c8   :  { %v258_v36 = vsel %vm257_vm3, %v256_v34, 0.0 }
 0x1c9   :  { %v292_v37 = vsel %vm291_vm4, %v258_v36, %v286_v33 }
 0x1ca   :  { %v294_v38 = vsel %vm293_vm5, %v292_v37, %v289_v35 }
 0x1cb   :  { %v296_v39 = vsel %vm295_vm6, %v294_v38, 0.0 }
 0x1cc   :  { %v297_v40 = vpack.c.bf16 %v296_v39, %v296_v39 }
 0x1ce   :  { %298 = vst [vmem:[%s542_s6] sm:$0xf] %v297_v40 }

</bundles_post_ra>
